<compile_context>
chip_gen: v7x
topology: tpu7x:2x2x1
jax: 0.10.0
libtpu: 0.0.40
codegen_flags: <defaults>
</compile_context>

<pallas_src>
import jax
import jax.numpy as jnp
import numpy as np
from jax import lax
from jax.experimental import pallas as pl
from jax.experimental.pallas import tpu as pltpu

_LANE = 128  # TPU vreg lane width


def _lstm_kernel(x_ref, wih_ref, whh_ref, b_ref, wfc_ref, bfc_ref,
                 out_ref, xp_ref):
    """Whole LSTM forward in one invocation.

    x_ref   : (T*Bp, D)   bf16  time-major input, batch padded to Bp sublanes
    wih_ref : (D,  4*H)   bf16  W_ih^T, columns packed [i, f, o/2, g]
    whh_ref : (H,  4*H)   bf16  W_hh^T, columns packed [i, f, o/2, g]
    b_ref   : (1,  4*H)   f32   b_ih + b_hh, columns packed [i, f, o/2, g]
    wfc_ref : (1,  H)     f32   fc weight row
    bfc_ref : (1,  LANE)  f32   fc bias broadcast across lanes
    out_ref : (Bp, LANE)  f32   sigmoid(fc(h_T)) broadcast across lanes
    xp_ref  : (T*Bp, 4*H) f32   VMEM scratch holding the hoisted x-projection
    """
    TB = x_ref.shape[0]
    H = whh_ref.shape[0]
    Bp = out_ref.shape[0]
    T = TB // Bp

    # Hoisted non-recurrent projection (one MXU pass for all T steps), bias
    # folded in so nothing is re-broadcast inside the serial loop.
    xp_ref[...] = (jnp.dot(x_ref[...], wih_ref[...],
                           preferred_element_type=jnp.float32)
                   + b_ref[...])

    h0 = jnp.zeros((Bp, H), jnp.float32)
    c0 = jnp.zeros((Bp, H), jnp.float32)

    def step(t, carry):
        h, c = carry
        row = pl.multiple_of(t * Bp, Bp)
        # Only the truly recurrent (Bp, H) @ (H, 4H) matmul sits on the serial
        # critical path; operands bf16, accumulation f32.
        gates = xp_ref[pl.ds(row, Bp), :] + jnp.dot(
            h.astype(jnp.bfloat16), whh_ref[...],
            preferred_element_type=jnp.float32)            # (Bp, 4*H)
        # One activation per 128-lane vreg: sigmoid over [i|f], tanh over
        # [o/2|g].  sigmoid(z_o) == 0.5*(1 + tanh(z_o/2)) (0.5 folded into the
        # o-columns of the packed weights/bias).
        sig = jax.nn.sigmoid(gates[:, :2 * H])             # [i | f]
        tnh = jnp.tanh(gates[:, 2 * H:])                   # [tanh(z_o/2) | g]
        i = sig[:, :H]
        f = sig[:, H:]
        o = 0.5 + 0.5 * tnh[:, :H]
        g = tnh[:, H:]
        c_new = f * c + i * g
        h_new = o * jnp.tanh(c_new)
        return h_new, c_new

    h_T, _ = lax.fori_loop(0, T, step, (h0, c0),
                           unroll=True if T <= 16 else 8)

    # FC head: lane reduction against the fc row + bias + sigmoid, stored as a
    # lane-dense (Bp, 128) slab (value broadcast across lanes).
    logit = jnp.sum(h_T * wfc_ref[...], axis=-1, keepdims=True)   # (Bp, 1)
    out_ref[...] = jax.nn.sigmoid(logit + bfc_ref[...])


def lstm_model_forward(x, params):
    """x: (B, T, D) batch-first (PyTorch convention). Returns (B,) probabilities."""
    w_ih, w_hh, b_ih, b_hh, w_fc, b_fc = (
        params["w_ih"], params["w_hh"], params["b_ih"], params["b_hh"],
        params["w_fc"], params["b_fc"])

    B, T, D = x.shape
    H = w_hh.shape[1]
    Bp = max(8, -(-B // 8) * 8)          # pad batch (sublane dim) to multiple of 8
    f32, bf16 = jnp.float32, jnp.bfloat16

    # ---- parameter / layout prep (plain JAX glue, runs once) ----
    def pack_gates(w_t):
        # columns in PyTorch order [i, f, g, o]  ->  packed order [i, f, o/2, g]
        w_t = w_t.astype(f32)
        gi = w_t[:, 0 * H:1 * H]
        gf = w_t[:, 1 * H:2 * H]
        gg = w_t[:, 2 * H:3 * H]
        go = w_t[:, 3 * H:4 * H]
        return jnp.concatenate([gi, gf, 0.5 * go, gg], axis=-1)

    wih_p = pack_gates(jnp.transpose(w_ih)).astype(bf16)             # (D, 4H)
    whh_p = pack_gates(jnp.transpose(w_hh)).astype(bf16)             # (H, 4H)
    b_p = pack_gates((b_ih + b_hh).reshape(1, 4 * H))                # (1, 4H) f32
    wfc_p = w_fc.astype(f32).reshape(1, H)                           # (1, H)
    bfc_p = jnp.full((1, _LANE), b_fc[0], f32)                       # (1, LANE)

    # Time-major, batch padded to Bp, flattened to (T*Bp, D), bf16 operand for
    # the hoisted x-projection. Padded rows are zero and are sliced off below.
    x_tm = jnp.transpose(x, (1, 0, 2)).astype(f32)                   # (T, B, D)
    x_p = jnp.zeros((T, Bp, D), f32).at[:, :B, :].set(x_tm)
    x_p = x_p.reshape(T * Bp, D).astype(bf16)

    # TODO(synk): for long sequences / huge batches, tile the hoisted
    # x-projection over T-chunks (emit_pipeline) instead of one VMEM scratch.
    out = pl.pallas_call(
        _lstm_kernel,
        out_shape=jax.ShapeDtypeStruct((Bp, _LANE), f32),
        in_specs=[pl.BlockSpec(memory_space=pltpu.MemorySpace.VMEM)] * 6,
        out_specs=pl.BlockSpec(memory_space=pltpu.MemorySpace.VMEM),
        scratch_shapes=[pltpu.VMEM((T * Bp, 4 * H), f32)],           # hoisted x-proj
        compiler_params=pltpu.CompilerParams(vmem_limit_bytes=32 * 1024 * 1024),
    )(x_p, wih_p, whh_p, b_p, wfc_p, bfc_p)

    return out[:B, 0]                                                # squeeze(-1)


def lstm_model_reference(x, params):
    """Pure-JAX reference of the PyTorch forward (for correctness check)."""
    w_ih, w_hh, b_ih, b_hh, w_fc, b_fc = (
        params["w_ih"], params["w_hh"], params["b_ih"], params["b_hh"],
        params["w_fc"], params["b_fc"])
    B, T, D = x.shape
    H = w_hh.shape[1]
    h = jnp.zeros((B, H), jnp.float32)
    c = jnp.zeros((B, H), jnp.float32)
    for t in range(T):
        gates = x[:, t, :] @ w_ih.T + h @ w_hh.T + b_ih + b_hh
        i = jax.nn.sigmoid(gates[:, 0 * H:1 * H])
        f = jax.nn.sigmoid(gates[:, 1 * H:2 * H])
        g = jnp.tanh(gates[:, 2 * H:3 * H])
        o = jax.nn.sigmoid(gates[:, 3 * H:4 * H])
        c = f * c + i * g
        h = o * jnp.tanh(c)
    logit = h @ w_fc.T + b_fc
    return jax.nn.sigmoid(logit)[:, 0]


if __name__ == "__main__":
    # Small shapes consistent with the module: batch=2, seq=8, input=16, hidden=64.
    B, T, D, H = 2, 8, 16, 64

    key = jax.random.PRNGKey(0)
    ks = jax.random.split(key, 7)
    scale = 1.0 / np.sqrt(H)             # PyTorch default uniform(-1/sqrt(H), 1/sqrt(H))
    params = {
        "w_ih": jax.random.uniform(ks[0], (4 * H, D), jnp.float32, -scale, scale),
        "w_hh": jax.random.uniform(ks[1], (4 * H, H), jnp.float32, -scale, scale),
        "b_ih": jax.random.uniform(ks[2], (4 * H,), jnp.float32, -scale, scale),
        "b_hh": jax.random.uniform(ks[3], (4 * H,), jnp.float32, -scale, scale),
        "w_fc": jax.random.uniform(ks[4], (1, H), jnp.float32, -scale, scale),
        "b_fc": jax.random.uniform(ks[5], (1,), jnp.float32, -scale, scale),
    }
    x = jax.random.normal(ks[6], (B, T, D), jnp.float32)

    out = jax.block_until_ready(lstm_model_forward(x, params))
    ref = jax.block_until_ready(lstm_model_reference(x, params))

    assert out.shape == (B,)
    # bf16 matmul operands (f32 accumulation) -> loosened tolerance vs f32 ref.
    np.testing.assert_allclose(np.asarray(out), np.asarray(ref), rtol=1e-2, atol=1e-2)
    print("KERNEL_OK")
</pallas_src>

<mosaic_0001>
module attributes {stable_mosaic.version = 11 : i64} {
  func.func @_lstm_kernel(%arg0: memref<64x16xbf16, #tpu.memory_space<vmem>>, %arg1: memref<16x256xbf16, #tpu.memory_space<vmem>>, %arg2: memref<64x256xbf16, #tpu.memory_space<vmem>>, %arg3: memref<1x256xf32, #tpu.memory_space<vmem>>, %arg4: memref<1x64xf32, #tpu.memory_space<vmem>>, %arg5: memref<1x128xf32, #tpu.memory_space<vmem>>, %arg6: memref<8x128xf32, #tpu.memory_space<vmem>>, %arg7: memref<64x256xf32, #tpu.memory_space<vmem>>) attributes {dimension_semantics = [], scalar_prefetch = 0 : i64, scratch_operands = 1 : i64, tpu.core_type = #tpu.core_type<tc>} {
    %c0 = arith.constant 0 : index
    %c0_0 = arith.constant 0 : index
    %0 = vector.load %arg0[%c0, %c0_0] : memref<64x16xbf16, #tpu.memory_space<vmem>>, vector<64x16xbf16>
    %c0_1 = arith.constant 0 : index
    %c0_2 = arith.constant 0 : index
    %1 = vector.load %arg1[%c0_1, %c0_2] : memref<16x256xbf16, #tpu.memory_space<vmem>>, vector<16x256xbf16>
    %cst = arith.constant dense<0.000000e+00> : vector<64x256xf32>
    %2 = tpu.matmul %0, %1, %cst {dimension_numbers = #tpu.dot_dimension_numbers<[1], [0], [0], [1], [0, 0, 1, 1], [], []>} : vector<64x16xbf16>, vector<16x256xbf16>, vector<64x256xf32> -> vector<64x256xf32>
    %c0_3 = arith.constant 0 : index
    %c0_4 = arith.constant 0 : index
    %3 = vector.load %arg3[%c0_3, %c0_4] : memref<1x256xf32, #tpu.memory_space<vmem>>, vector<1x256xf32>
    %4 = vector.broadcast %3 : vector<1x256xf32> to vector<64x256xf32>
    %5 = arith.addf %2, %4 : vector<64x256xf32>
    %c0_5 = arith.constant 0 : index
    %c0_6 = arith.constant 0 : index
    %6 = vector.load %arg7[%c0_5, %c0_6] : memref<64x256xf32, #tpu.memory_space<vmem>>, vector<64x256xf32>
    tpu.vector_store %arg7[%c0_5, %c0_6], %5 {strides = array<i32>} : memref<64x256xf32, #tpu.memory_space<vmem>>, vector<64x256xf32>,
    %cst_7 = arith.constant 0.000000e+00 : f32
    %7 = vector.broadcast %cst_7 : f32 to vector<8x64xf32>
    %cst_8 = arith.constant 0.000000e+00 : f32
    %8 = vector.broadcast %cst_8 : f32 to vector<8x64xf32>
    %c0_i32 = arith.constant 0 : i32
    %c8_i32 = arith.constant 8 : i32
    %9 = arith.muli %c0_i32, %c8_i32 : i32
    %10 = tpu.assume_multiple %9, 8 : i32
    %11 = arith.index_cast %10 : i32 to index
    %c0_9 = arith.constant 0 : index
    %12 = vector.load %arg7[%11, %c0_9] : memref<64x256xf32, #tpu.memory_space<vmem>>, vector<8x256xf32>
    %13 = arith.truncf %7 : vector<8x64xf32> to vector<8x64xbf16>
    %c0_10 = arith.constant 0 : index
    %c0_11 = arith.constant 0 : index
    %14 = vector.load %arg2[%c0_10, %c0_11] : memref<64x256xbf16, #tpu.memory_space<vmem>>, vector<64x256xbf16>
    %cst_12 = arith.constant dense<0.000000e+00> : vector<8x256xf32>
    %15 = tpu.matmul %13, %14, %cst_12 {dimension_numbers = #tpu.dot_dimension_numbers<[1], [0], [0], [1], [0, 0, 1, 1], [], []>} : vector<8x64xbf16>, vector<64x256xbf16>, vector<8x256xf32> -> vector<8x256xf32>
    %16 = arith.addf %12, %15 : vector<8x256xf32>
    %17 = vector.extract_strided_slice %16 {offsets = [0, 0], sizes = [8, 128], strides = [1, 1]} : vector<8x256xf32> to vector<8x128xf32>
    %18 = arith.negf %17 : vector<8x128xf32>
    %19 = math.exp %18 : vector<8x128xf32>
    %cst_13 = arith.constant 1.000000e+00 : f32
    %20 = vector.broadcast %cst_13 : f32 to vector<8x128xf32>
    %21 = arith.addf %20, %19 : vector<8x128xf32>
    %22 = arith.divf %20, %21 : vector<8x128xf32>
    %23 = vector.extract_strided_slice %16 {offsets = [0, 128], sizes = [8, 128], strides = [1, 1]} : vector<8x256xf32> to vector<8x128xf32>
    %24 = math.tanh %23 : vector<8x128xf32>
    %25 = vector.extract_strided_slice %22 {offsets = [0, 0], sizes = [8, 64], strides = [1, 1]} : vector<8x128xf32> to vector<8x64xf32>
    %26 = vector.extract_strided_slice %22 {offsets = [0, 64], sizes = [8, 64], strides = [1, 1]} : vector<8x128xf32> to vector<8x64xf32>
    %27 = vector.extract_strided_slice %24 {offsets = [0, 0], sizes = [8, 64], strides = [1, 1]} : vector<8x128xf32> to vector<8x64xf32>
    %cst_14 = arith.constant 5.000000e-01 : f32
    %28 = vector.broadcast %cst_14 : f32 to vector<8x64xf32>
    %29 = arith.mulf %28, %27 : vector<8x64xf32>
    %cst_15 = arith.constant 5.000000e-01 : f32
    %30 = vector.broadcast %cst_15 : f32 to vector<8x64xf32>
    %31 = arith.addf %30, %29 : vector<8x64xf32>
    %32 = vector.extract_strided_slice %24 {offsets = [0, 64], sizes = [8, 64], strides = [1, 1]} : vector<8x128xf32> to vector<8x64xf32>
    %33 = arith.mulf %26, %8 : vector<8x64xf32>
    %34 = arith.mulf %25, %32 : vector<8x64xf32>
    %35 = arith.addf %33, %34 : vector<8x64xf32>
    %36 = math.tanh %35 : vector<8x64xf32>
    %37 = arith.mulf %31, %36 : vector<8x64xf32>
    %c1_i32 = arith.constant 1 : i32
    %c8_i32_16 = arith.constant 8 : i32
    %38 = arith.muli %c1_i32, %c8_i32_16 : i32
    %39 = tpu.assume_multiple %38, 8 : i32
    %40 = arith.index_cast %39 : i32 to index
    %c0_17 = arith.constant 0 : index
    %41 = vector.load %arg7[%40, %c0_17] : memref<64x256xf32, #tpu.memory_space<vmem>>, vector<8x256xf32>
    %42 = arith.truncf %37 : vector<8x64xf32> to vector<8x64xbf16>
    %c0_18 = arith.constant 0 : index
    %c0_19 = arith.constant 0 : index
    %43 = vector.load %arg2[%c0_18, %c0_19] : memref<64x256xbf16, #tpu.memory_space<vmem>>, vector<64x256xbf16>
    %cst_20 = arith.constant dense<0.000000e+00> : vector<8x256xf32>
    %44 = tpu.matmul %42, %43, %cst_20 {dimension_numbers = #tpu.dot_dimension_numbers<[1], [0], [0], [1], [0, 0, 1, 1], [], []>} : vector<8x64xbf16>, vector<64x256xbf16>, vector<8x256xf32> -> vector<8x256xf32>
    %45 = arith.addf %41, %44 : vector<8x256xf32>
    %46 = vector.extract_strided_slice %45 {offsets = [0, 0], sizes = [8, 128], strides = [1, 1]} : vector<8x256xf32> to vector<8x128xf32>
    %47 = arith.negf %46 : vector<8x128xf32>
    %48 = math.exp %47 : vector<8x128xf32>
    %cst_21 = arith.constant 1.000000e+00 : f32
    %49 = vector.broadcast %cst_21 : f32 to vector<8x128xf32>
    %50 = arith.addf %49, %48 : vector<8x128xf32>
    %51 = arith.divf %49, %50 : vector<8x128xf32>
    %52 = vector.extract_strided_slice %45 {offsets = [0, 128], sizes = [8, 128], strides = [1, 1]} : vector<8x256xf32> to vector<8x128xf32>
    %53 = math.tanh %52 : vector<8x128xf32>
    %54 = vector.extract_strided_slice %51 {offsets = [0, 0], sizes = [8, 64], strides = [1, 1]} : vector<8x128xf32> to vector<8x64xf32>
    %55 = vector.extract_strided_slice %51 {offsets = [0, 64], sizes = [8, 64], strides = [1, 1]} : vector<8x128xf32> to vector<8x64xf32>
    %56 = vector.extract_strided_slice %53 {offsets = [0, 0], sizes = [8, 64], strides = [1, 1]} : vector<8x128xf32> to vector<8x64xf32>
    %cst_22 = arith.constant 5.000000e-01 : f32
    %57 = vector.broadcast %cst_22 : f32 to vector<8x64xf32>
    %58 = arith.mulf %57, %56 : vector<8x64xf32>
    %cst_23 = arith.constant 5.000000e-01 : f32
    %59 = vector.broadcast %cst_23 : f32 to vector<8x64xf32>
    %60 = arith.addf %59, %58 : vector<8x64xf32>
    %61 = vector.extract_strided_slice %53 {offsets = [0, 64], sizes = [8, 64], strides = [1, 1]} : vector<8x128xf32> to vector<8x64xf32>
    %62 = arith.mulf %55, %35 : vector<8x64xf32>
    %63 = arith.mulf %54, %61 : vector<8x64xf32>
    %64 = arith.addf %62, %63 : vector<8x64xf32>
    %65 = math.tanh %64 : vector<8x64xf32>
    %66 = arith.mulf %60, %65 : vector<8x64xf32>
    %c2_i32 = arith.constant 2 : i32
    %c8_i32_24 = arith.constant 8 : i32
    %67 = arith.muli %c2_i32, %c8_i32_24 : i32
    %68 = tpu.assume_multiple %67, 8 : i32
    %69 = arith.index_cast %68 : i32 to index
    %c0_25 = arith.constant 0 : index
    %70 = vector.load %arg7[%69, %c0_25] : memref<64x256xf32, #tpu.memory_space<vmem>>, vector<8x256xf32>
    %71 = arith.truncf %66 : vector<8x64xf32> to vector<8x64xbf16>
    %c0_26 = arith.constant 0 : index
    %c0_27 = arith.constant 0 : index
    %72 = vector.load %arg2[%c0_26, %c0_27] : memref<64x256xbf16, #tpu.memory_space<vmem>>, vector<64x256xbf16>
    %cst_28 = arith.constant dense<0.000000e+00> : vector<8x256xf32>
    %73 = tpu.matmul %71, %72, %cst_28 {dimension_numbers = #tpu.dot_dimension_numbers<[1], [0], [0], [1], [0, 0, 1, 1], [], []>} : vector<8x64xbf16>, vector<64x256xbf16>, vector<8x256xf32> -> vector<8x256xf32>
    %74 = arith.addf %70, %73 : vector<8x256xf32>
    %75 = vector.extract_strided_slice %74 {offsets = [0, 0], sizes = [8, 128], strides = [1, 1]} : vector<8x256xf32> to vector<8x128xf32>
    %76 = arith.negf %75 : vector<8x128xf32>
    %77 = math.exp %76 : vector<8x128xf32>
    %cst_29 = arith.constant 1.000000e+00 : f32
    %78 = vector.broadcast %cst_29 : f32 to vector<8x128xf32>
    %79 = arith.addf %78, %77 : vector<8x128xf32>
    %80 = arith.divf %78, %79 : vector<8x128xf32>
    %81 = vector.extract_strided_slice %74 {offsets = [0, 128], sizes = [8, 128], strides = [1, 1]} : vector<8x256xf32> to vector<8x128xf32>
    %82 = math.tanh %81 : vector<8x128xf32>
    %83 = vector.extract_strided_slice %80 {offsets = [0, 0], sizes = [8, 64], strides = [1, 1]} : vector<8x128xf32> to vector<8x64xf32>
    %84 = vector.extract_strided_slice %80 {offsets = [0, 64], sizes = [8, 64], strides = [1, 1]} : vector<8x128xf32> to vector<8x64xf32>
    %85 = vector.extract_strided_slice %82 {offsets = [0, 0], sizes = [8, 64], strides = [1, 1]} : vector<8x128xf32> to vector<8x64xf32>
    %cst_30 = arith.constant 5.000000e-01 : f32
    %86 = vector.broadcast %cst_30 : f32 to vector<8x64xf32>
    %87 = arith.mulf %86, %85 : vector<8x64xf32>
    %cst_31 = arith.constant 5.000000e-01 : f32
    %88 = vector.broadcast %cst_31 : f32 to vector<8x64xf32>
    %89 = arith.addf %88, %87 : vector<8x64xf32>
    %90 = vector.extract_strided_slice %82 {offsets = [0, 64], sizes = [8, 64], strides = [1, 1]} : vector<8x128xf32> to vector<8x64xf32>
    %91 = arith.mulf %84, %64 : vector<8x64xf32>
    %92 = arith.mulf %83, %90 : vector<8x64xf32>
    %93 = arith.addf %91, %92 : vector<8x64xf32>
    %94 = math.tanh %93 : vector<8x64xf32>
    %95 = arith.mulf %89, %94 : vector<8x64xf32>
    %c3_i32 = arith.constant 3 : i32
    %c8_i32_32 = arith.constant 8 : i32
    %96 = arith.muli %c3_i32, %c8_i32_32 : i32
    %97 = tpu.assume_multiple %96, 8 : i32
    %98 = arith.index_cast %97 : i32 to index
    %c0_33 = arith.constant 0 : index
    %99 = vector.load %arg7[%98, %c0_33] : memref<64x256xf32, #tpu.memory_space<vmem>>, vector<8x256xf32>
    %100 = arith.truncf %95 : vector<8x64xf32> to vector<8x64xbf16>
    %c0_34 = arith.constant 0 : index
    %c0_35 = arith.constant 0 : index
    %101 = vector.load %arg2[%c0_34, %c0_35] : memref<64x256xbf16, #tpu.memory_space<vmem>>, vector<64x256xbf16>
    %cst_36 = arith.constant dense<0.000000e+00> : vector<8x256xf32>
    %102 = tpu.matmul %100, %101, %cst_36 {dimension_numbers = #tpu.dot_dimension_numbers<[1], [0], [0], [1], [0, 0, 1, 1], [], []>} : vector<8x64xbf16>, vector<64x256xbf16>, vector<8x256xf32> -> vector<8x256xf32>
    %103 = arith.addf %99, %102 : vector<8x256xf32>
    %104 = vector.extract_strided_slice %103 {offsets = [0, 0], sizes = [8, 128], strides = [1, 1]} : vector<8x256xf32> to vector<8x128xf32>
    %105 = arith.negf %104 : vector<8x128xf32>
    %106 = math.exp %105 : vector<8x128xf32>
    %cst_37 = arith.constant 1.000000e+00 : f32
    %107 = vector.broadcast %cst_37 : f32 to vector<8x128xf32>
    %108 = arith.addf %107, %106 : vector<8x128xf32>
    %109 = arith.divf %107, %108 : vector<8x128xf32>
    %110 = vector.extract_strided_slice %103 {offsets = [0, 128], sizes = [8, 128], strides = [1, 1]} : vector<8x256xf32> to vector<8x128xf32>
    %111 = math.tanh %110 : vector<8x128xf32>
    %112 = vector.extract_strided_slice %109 {offsets = [0, 0], sizes = [8, 64], strides = [1, 1]} : vector<8x128xf32> to vector<8x64xf32>
    %113 = vector.extract_strided_slice %109 {offsets = [0, 64], sizes = [8, 64], strides = [1, 1]} : vector<8x128xf32> to vector<8x64xf32>
    %114 = vector.extract_strided_slice %111 {offsets = [0, 0], sizes = [8, 64], strides = [1, 1]} : vector<8x128xf32> to vector<8x64xf32>
    %cst_38 = arith.constant 5.000000e-01 : f32
    %115 = vector.broadcast %cst_38 : f32 to vector<8x64xf32>
    %116 = arith.mulf %115, %114 : vector<8x64xf32>
    %cst_39 = arith.constant 5.000000e-01 : f32
    %117 = vector.broadcast %cst_39 : f32 to vector<8x64xf32>
    %118 = arith.addf %117, %116 : vector<8x64xf32>
    %119 = vector.extract_strided_slice %111 {offsets = [0, 64], sizes = [8, 64], strides = [1, 1]} : vector<8x128xf32> to vector<8x64xf32>
    %120 = arith.mulf %113, %93 : vector<8x64xf32>
    %121 = arith.mulf %112, %119 : vector<8x64xf32>
    %122 = arith.addf %120, %121 : vector<8x64xf32>
    %123 = math.tanh %122 : vector<8x64xf32>
    %124 = arith.mulf %118, %123 : vector<8x64xf32>
    %c4_i32 = arith.constant 4 : i32
    %c8_i32_40 = arith.constant 8 : i32
    %125 = arith.muli %c4_i32, %c8_i32_40 : i32
    %126 = tpu.assume_multiple %125, 8 : i32
    %127 = arith.index_cast %126 : i32 to index
    %c0_41 = arith.constant 0 : index
    %128 = vector.load %arg7[%127, %c0_41] : memref<64x256xf32, #tpu.memory_space<vmem>>, vector<8x256xf32>
    %129 = arith.truncf %124 : vector<8x64xf32> to vector<8x64xbf16>
    %c0_42 = arith.constant 0 : index
    %c0_43 = arith.constant 0 : index
    %130 = vector.load %arg2[%c0_42, %c0_43] : memref<64x256xbf16, #tpu.memory_space<vmem>>, vector<64x256xbf16>
    %cst_44 = arith.constant dense<0.000000e+00> : vector<8x256xf32>
    %131 = tpu.matmul %129, %130, %cst_44 {dimension_numbers = #tpu.dot_dimension_numbers<[1], [0], [0], [1], [0, 0, 1, 1], [], []>} : vector<8x64xbf16>, vector<64x256xbf16>, vector<8x256xf32> -> vector<8x256xf32>
    %132 = arith.addf %128, %131 : vector<8x256xf32>
    %133 = vector.extract_strided_slice %132 {offsets = [0, 0], sizes = [8, 128], strides = [1, 1]} : vector<8x256xf32> to vector<8x128xf32>
    %134 = arith.negf %133 : vector<8x128xf32>
    %135 = math.exp %134 : vector<8x128xf32>
    %cst_45 = arith.constant 1.000000e+00 : f32
    %136 = vector.broadcast %cst_45 : f32 to vector<8x128xf32>
    %137 = arith.addf %136, %135 : vector<8x128xf32>
    %138 = arith.divf %136, %137 : vector<8x128xf32>
    %139 = vector.extract_strided_slice %132 {offsets = [0, 128], sizes = [8, 128], strides = [1, 1]} : vector<8x256xf32> to vector<8x128xf32>
    %140 = math.tanh %139 : vector<8x128xf32>
    %141 = vector.extract_strided_slice %138 {offsets = [0, 0], sizes = [8, 64], strides = [1, 1]} : vector<8x128xf32> to vector<8x64xf32>
    %142 = vector.extract_strided_slice %138 {offsets = [0, 64], sizes = [8, 64], strides = [1, 1]} : vector<8x128xf32> to vector<8x64xf32>
    %143 = vector.extract_strided_slice %140 {offsets = [0, 0], sizes = [8, 64], strides = [1, 1]} : vector<8x128xf32> to vector<8x64xf32>
    %cst_46 = arith.constant 5.000000e-01 : f32
    %144 = vector.broadcast %cst_46 : f32 to vector<8x64xf32>
    %145 = arith.mulf %144, %143 : vector<8x64xf32>
    %cst_47 = arith.constant 5.000000e-01 : f32
    %146 = vector.broadcast %cst_47 : f32 to vector<8x64xf32>
    %147 = arith.addf %146, %145 : vector<8x64xf32>
    %148 = vector.extract_strided_slice %140 {offsets = [0, 64], sizes = [8, 64], strides = [1, 1]} : vector<8x128xf32> to vector<8x64xf32>
    %149 = arith.mulf %142, %122 : vector<8x64xf32>
    %150 = arith.mulf %141, %148 : vector<8x64xf32>
    %151 = arith.addf %149, %150 : vector<8x64xf32>
    %152 = math.tanh %151 : vector<8x64xf32>
    %153 = arith.mulf %147, %152 : vector<8x64xf32>
    %c5_i32 = arith.constant 5 : i32
    %c8_i32_48 = arith.constant 8 : i32
    %154 = arith.muli %c5_i32, %c8_i32_48 : i32
    %155 = tpu.assume_multiple %154, 8 : i32
    %156 = arith.index_cast %155 : i32 to index
    %c0_49 = arith.constant 0 : index
    %157 = vector.load %arg7[%156, %c0_49] : memref<64x256xf32, #tpu.memory_space<vmem>>, vector<8x256xf32>
    %158 = arith.truncf %153 : vector<8x64xf32> to vector<8x64xbf16>
    %c0_50 = arith.constant 0 : index
    %c0_51 = arith.constant 0 : index
    %159 = vector.load %arg2[%c0_50, %c0_51] : memref<64x256xbf16, #tpu.memory_space<vmem>>, vector<64x256xbf16>
    %cst_52 = arith.constant dense<0.000000e+00> : vector<8x256xf32>
    %160 = tpu.matmul %158, %159, %cst_52 {dimension_numbers = #tpu.dot_dimension_numbers<[1], [0], [0], [1], [0, 0, 1, 1], [], []>} : vector<8x64xbf16>, vector<64x256xbf16>, vector<8x256xf32> -> vector<8x256xf32>
    %161 = arith.addf %157, %160 : vector<8x256xf32>
    %162 = vector.extract_strided_slice %161 {offsets = [0, 0], sizes = [8, 128], strides = [1, 1]} : vector<8x256xf32> to vector<8x128xf32>
    %163 = arith.negf %162 : vector<8x128xf32>
    %164 = math.exp %163 : vector<8x128xf32>
    %cst_53 = arith.constant 1.000000e+00 : f32
    %165 = vector.broadcast %cst_53 : f32 to vector<8x128xf32>
    %166 = arith.addf %165, %164 : vector<8x128xf32>
    %167 = arith.divf %165, %166 : vector<8x128xf32>
    %168 = vector.extract_strided_slice %161 {offsets = [0, 128], sizes = [8, 128], strides = [1, 1]} : vector<8x256xf32> to vector<8x128xf32>
    %169 = math.tanh %168 : vector<8x128xf32>
    %170 = vector.extract_strided_slice %167 {offsets = [0, 0], sizes = [8, 64], strides = [1, 1]} : vector<8x128xf32> to vector<8x64xf32>
    %171 = vector.extract_strided_slice %167 {offsets = [0, 64], sizes = [8, 64], strides = [1, 1]} : vector<8x128xf32> to vector<8x64xf32>
    %172 = vector.extract_strided_slice %169 {offsets = [0, 0], sizes = [8, 64], strides = [1, 1]} : vector<8x128xf32> to vector<8x64xf32>
    %cst_54 = arith.constant 5.000000e-01 : f32
    %173 = vector.broadcast %cst_54 : f32 to vector<8x64xf32>
    %174 = arith.mulf %173, %172 : vector<8x64xf32>
    %cst_55 = arith.constant 5.000000e-01 : f32
    %175 = vector.broadcast %cst_55 : f32 to vector<8x64xf32>
    %176 = arith.addf %175, %174 : vector<8x64xf32>
    %177 = vector.extract_strided_slice %169 {offsets = [0, 64], sizes = [8, 64], strides = [1, 1]} : vector<8x128xf32> to vector<8x64xf32>
    %178 = arith.mulf %171, %151 : vector<8x64xf32>
    %179 = arith.mulf %170, %177 : vector<8x64xf32>
    %180 = arith.addf %178, %179 : vector<8x64xf32>
    %181 = math.tanh %180 : vector<8x64xf32>
    %182 = arith.mulf %176, %181 : vector<8x64xf32>
    %c6_i32 = arith.constant 6 : i32
    %c8_i32_56 = arith.constant 8 : i32
    %183 = arith.muli %c6_i32, %c8_i32_56 : i32
    %184 = tpu.assume_multiple %183, 8 : i32
    %185 = arith.index_cast %184 : i32 to index
    %c0_57 = arith.constant 0 : index
    %186 = vector.load %arg7[%185, %c0_57] : memref<64x256xf32, #tpu.memory_space<vmem>>, vector<8x256xf32>
    %187 = arith.truncf %182 : vector<8x64xf32> to vector<8x64xbf16>
    %c0_58 = arith.constant 0 : index
    %c0_59 = arith.constant 0 : index
    %188 = vector.load %arg2[%c0_58, %c0_59] : memref<64x256xbf16, #tpu.memory_space<vmem>>, vector<64x256xbf16>
    %cst_60 = arith.constant dense<0.000000e+00> : vector<8x256xf32>
    %189 = tpu.matmul %187, %188, %cst_60 {dimension_numbers = #tpu.dot_dimension_numbers<[1], [0], [0], [1], [0, 0, 1, 1], [], []>} : vector<8x64xbf16>, vector<64x256xbf16>, vector<8x256xf32> -> vector<8x256xf32>
    %190 = arith.addf %186, %189 : vector<8x256xf32>
    %191 = vector.extract_strided_slice %190 {offsets = [0, 0], sizes = [8, 128], strides = [1, 1]} : vector<8x256xf32> to vector<8x128xf32>
    %192 = arith.negf %191 : vector<8x128xf32>
    %193 = math.exp %192 : vector<8x128xf32>
    %cst_61 = arith.constant 1.000000e+00 : f32
    %194 = vector.broadcast %cst_61 : f32 to vector<8x128xf32>
    %195 = arith.addf %194, %193 : vector<8x128xf32>
    %196 = arith.divf %194, %195 : vector<8x128xf32>
    %197 = vector.extract_strided_slice %190 {offsets = [0, 128], sizes = [8, 128], strides = [1, 1]} : vector<8x256xf32> to vector<8x128xf32>
    %198 = math.tanh %197 : vector<8x128xf32>
    %199 = vector.extract_strided_slice %196 {offsets = [0, 0], sizes = [8, 64], strides = [1, 1]} : vector<8x128xf32> to vector<8x64xf32>
    %200 = vector.extract_strided_slice %196 {offsets = [0, 64], sizes = [8, 64], strides = [1, 1]} : vector<8x128xf32> to vector<8x64xf32>
    %201 = vector.extract_strided_slice %198 {offsets = [0, 0], sizes = [8, 64], strides = [1, 1]} : vector<8x128xf32> to vector<8x64xf32>
    %cst_62 = arith.constant 5.000000e-01 : f32
    %202 = vector.broadcast %cst_62 : f32 to vector<8x64xf32>
    %203 = arith.mulf %202, %201 : vector<8x64xf32>
    %cst_63 = arith.constant 5.000000e-01 : f32
    %204 = vector.broadcast %cst_63 : f32 to vector<8x64xf32>
    %205 = arith.addf %204, %203 : vector<8x64xf32>
    %206 = vector.extract_strided_slice %198 {offsets = [0, 64], sizes = [8, 64], strides = [1, 1]} : vector<8x128xf32> to vector<8x64xf32>
    %207 = arith.mulf %200, %180 : vector<8x64xf32>
    %208 = arith.mulf %199, %206 : vector<8x64xf32>
    %209 = arith.addf %207, %208 : vector<8x64xf32>
    %210 = math.tanh %209 : vector<8x64xf32>
    %211 = arith.mulf %205, %210 : vector<8x64xf32>
    %c7_i32 = arith.constant 7 : i32
    %c8_i32_64 = arith.constant 8 : i32
    %212 = arith.muli %c7_i32, %c8_i32_64 : i32
    %213 = tpu.assume_multiple %212, 8 : i32
    %214 = arith.index_cast %213 : i32 to index
    %c0_65 = arith.constant 0 : index
    %215 = vector.load %arg7[%214, %c0_65] : memref<64x256xf32, #tpu.memory_space<vmem>>, vector<8x256xf32>
    %216 = arith.truncf %211 : vector<8x64xf32> to vector<8x64xbf16>
    %c0_66 = arith.constant 0 : index
    %c0_67 = arith.constant 0 : index
    %217 = vector.load %arg2[%c0_66, %c0_67] : memref<64x256xbf16, #tpu.memory_space<vmem>>, vector<64x256xbf16>
    %cst_68 = arith.constant dense<0.000000e+00> : vector<8x256xf32>
    %218 = tpu.matmul %216, %217, %cst_68 {dimension_numbers = #tpu.dot_dimension_numbers<[1], [0], [0], [1], [0, 0, 1, 1], [], []>} : vector<8x64xbf16>, vector<64x256xbf16>, vector<8x256xf32> -> vector<8x256xf32>
    %219 = arith.addf %215, %218 : vector<8x256xf32>
    %220 = vector.extract_strided_slice %219 {offsets = [0, 0], sizes = [8, 128], strides = [1, 1]} : vector<8x256xf32> to vector<8x128xf32>
    %221 = arith.negf %220 : vector<8x128xf32>
    %222 = math.exp %221 : vector<8x128xf32>
    %cst_69 = arith.constant 1.000000e+00 : f32
    %223 = vector.broadcast %cst_69 : f32 to vector<8x128xf32>
    %224 = arith.addf %223, %222 : vector<8x128xf32>
    %225 = arith.divf %223, %224 : vector<8x128xf32>
    %226 = vector.extract_strided_slice %219 {offsets = [0, 128], sizes = [8, 128], strides = [1, 1]} : vector<8x256xf32> to vector<8x128xf32>
    %227 = math.tanh %226 : vector<8x128xf32>
    %228 = vector.extract_strided_slice %225 {offsets = [0, 0], sizes = [8, 64], strides = [1, 1]} : vector<8x128xf32> to vector<8x64xf32>
    %229 = vector.extract_strided_slice %225 {offsets = [0, 64], sizes = [8, 64], strides = [1, 1]} : vector<8x128xf32> to vector<8x64xf32>
    %230 = vector.extract_strided_slice %227 {offsets = [0, 0], sizes = [8, 64], strides = [1, 1]} : vector<8x128xf32> to vector<8x64xf32>
    %cst_70 = arith.constant 5.000000e-01 : f32
    %231 = vector.broadcast %cst_70 : f32 to vector<8x64xf32>
    %232 = arith.mulf %231, %230 : vector<8x64xf32>
    %cst_71 = arith.constant 5.000000e-01 : f32
    %233 = vector.broadcast %cst_71 : f32 to vector<8x64xf32>
    %234 = arith.addf %233, %232 : vector<8x64xf32>
    %235 = vector.extract_strided_slice %227 {offsets = [0, 64], sizes = [8, 64], strides = [1, 1]} : vector<8x128xf32> to vector<8x64xf32>
    %236 = arith.mulf %229, %209 : vector<8x64xf32>
    %237 = arith.mulf %228, %235 : vector<8x64xf32>
    %238 = arith.addf %236, %237 : vector<8x64xf32>
    %239 = math.tanh %238 : vector<8x64xf32>
    %240 = arith.mulf %234, %239 : vector<8x64xf32>
    %c8_i32_72 = arith.constant 8 : i32
    %c0_73 = arith.constant 0 : index
    %c0_74 = arith.constant 0 : index
    %241 = vector.load %arg4[%c0_73, %c0_74] : memref<1x64xf32, #tpu.memory_space<vmem>>, vector<1x64xf32>
    %242 = vector.broadcast %241 : vector<1x64xf32> to vector<8x64xf32>
    %243 = arith.mulf %240, %242 : vector<8x64xf32>
    %cst_75 = arith.constant dense<0.000000e+00> : vector<8xf32>
    %244 = vector.multi_reduction <add>, %243, %cst_75 [1] : vector<8x64xf32> to vector<8xf32>
    %245 = vector.shape_cast %244 : vector<8xf32> to vector<8x1xf32>
    %c0_76 = arith.constant 0 : index
    %c0_77 = arith.constant 0 : index
    %246 = vector.load %arg5[%c0_76, %c0_77] : memref<1x128xf32, #tpu.memory_space<vmem>>, vector<1x128xf32>
    %247 = vector.broadcast %245 : vector<8x1xf32> to vector<8x128xf32>
    %248 = vector.broadcast %246 : vector<1x128xf32> to vector<8x128xf32>
    %249 = arith.addf %247, %248 : vector<8x128xf32>
    %250 = arith.negf %249 : vector<8x128xf32>
    %251 = math.exp %250 : vector<8x128xf32>
    %cst_78 = arith.constant 1.000000e+00 : f32
    %252 = vector.broadcast %cst_78 : f32 to vector<8x128xf32>
    %253 = arith.addf %252, %251 : vector<8x128xf32>
    %254 = arith.divf %252, %253 : vector<8x128xf32>
    %c0_79 = arith.constant 0 : index
    %c0_80 = arith.constant 0 : index
    %255 = vector.load %arg6[%c0_79, %c0_80] : memref<8x128xf32, #tpu.memory_space<vmem>>, vector<8x128xf32>
    tpu.vector_store %arg6[%c0_79, %c0_80], %254 {strides = array<i32>} : memref<8x128xf32, #tpu.memory_space<vmem>>, vector<8x128xf32>,
    return
  }
}

</mosaic_0001>

<bundles_post_ra>
// kernel: tpu_custom_call.1
= control target key start
LH: loop header
LB: loop body
LE: loop exit
PB: predicated region body
PF: predicated region fallthrough
CT: control target
= control target key end

     0   :  { %11 = vsyncpa [#allocation4], 0  ;;  %s1361_s0 = inlined_call_operand.vmem [shape: bf16[64,16], index: 0, kind: input, shape index: {}]   ;;  %s1362_s1 = inlined_call_operand.vmem [shape: bf16[16,256], index: 1, kind: input, shape index: {}]   ;;  %s1363_s2 = inlined_call_operand.hbm [shape: bf16[64,256], index: 2, kind: input, shape index: {}]   ;;  %s1364_s3 = inlined_call_operand.vmem [shape: f32[1,256], index: 3, kind: input, shape index: {}]   ;;  %s1365_s4 = inlined_call_operand.vmem [shape: f32[1,64], index: 4, kind: input, shape index: {}]   ;;  %s1366_s5 = inlined_call_operand.vmem [shape: f32[1,128], index: 5, kind: input, shape index: {}]   ;;  %s1367_s6 = inlined_call_operand.hbm [shape: f32[8,128], index: 6, kind: output, shape index: {}]  }
   0x1   :  { %12 = vsyncpa [#allocation5], 0  ;;  %s1090_s21 = smov [#allocation3]   ;;  %s1042_s25 = scalar_lea.hbm %s1363_s2, 1024 }
   0x2   :  { %s22_s22 = sshll.u32 %s1090_s21, 4  ;;  %p1043_p0 = scmp.ne.s32.totalorder %s1363_s2, %s1042_s25  ;;  %s23_s22 = int_to_ptr.vmem [resolvable:$true] %s22_s22 }
   0x3   :  { %p1046_p1 = scmp.lt.u32.totalorder %s1042_s25, %s1363_s2 }
   0x5   :  { %p1048_p2 = pnand %p1046_p1, %p1043_p0 }
   0x7   :  { %1051 = shalt.err (!%p1048_p2)
}
   0x8   :  { %s1052_s30 = scalar_lea.vmem %s23_s22, 1024  ;;  %p1057_p4 = scmp.lt.s32.totalorder %s23_s22, %s23_s22 }
   0x9   :  { %p1053_p3 = scmp.ne.s32.totalorder %s23_s22, %s1052_s30  ;;  %p1058_p5 = scmp.lt.s32.totalorder %s1052_s30, %s1052_s30 }
   0xb   :  { %p1059_p6 = por %p1058_p5, %p1057_p4 }
   0xd   :  { %p1060_p7 = pnand %p1059_p6, %p1053_p3 }
   0xf   :  { %1063 = shalt.err (!%p1060_p7)
}
  0x10   :  { %s1091_s7 = smov 128   ;;  %s1092_s8 = smov 8  }
  0x11   :  { %28 = dma.hbm_to_vmem [thread:$0]  %s1363_s2, 1024, %s23_s22, [#allocation4], %s1091_s7, %s1091_s7, %s1092_s8  }
  0x12   :  { %1086 = dma.done.wait [#allocation4], 1024  }
  0x13   :  { %1087 = vsyncadd [#allocation4], 4294966272  ;;  %v1093_v0 = vmov 0   ;;  %v1145_v1 = vld [vmem:[#allocation3 + $0x4] ss:$8 sps:$4 sm:$0xff]   ;;  %vm91_vm0 = vcmask 130048   ;;  %v51_v12 = vlaneseq }
  0x14   :  { %136 = vmatprep.mubr.bf16.mxu0 %v1093_v0  ;;  %282 = vmatprep.mubr.bf16.mxu1 %v1093_v0  ;;  %v1147_v2 = vld [vmem:[#allocation3] ss:$8 sps:$4 sm:$0xff]   ;;  %v1150_v3 = vld [vmem:[#allocation3 + $0x14] ss:$8 sps:$4 sm:$0xff]   ;;  %v1152_v4 = vld [vmem:[#allocation3 + $0x10] ss:$8 sps:$4 sm:$0xff]  }
  0x15   :  { %250 = vmatprep.subr.bf16.mxu1 %v1145_v1  ;;  %v961_v5 = vld [vmem:[%s1362_s1 + $0x4] ss:$8 sps:$4 sm:$0xff]   ;;  %v963_v6 = vld [vmem:[%s1362_s1] ss:$8 sps:$4 sm:$0xff]   ;;  %v1170_v10 = vld [vmem:[#allocation3 + $0x34] ss:$8 sps:$4 sm:$0xff]  }
  0x16   :  { %251 = vmatpush1.bf16.msra.mxu1 %v1147_v2  ;;  %v1162_v7 = vld [vmem:[#allocation3 + $0x24] ss:$8 sps:$4 sm:$0xff]   ;;  %104 = vmatprep.subr.bf16.mxu0 %v961_v5  ;;  %v1168_v9 = vld [vmem:[#allocation3 + $0x20] ss:$8 sps:$4 sm:$0xff]   ;;  %v1178_v11 = vld [vmem:[#allocation3 + $0x30] ss:$8 sps:$4 sm:$0xff]  }
  0x17   :  { %252 = vmatprep.subr.bf16.mxu1 %v1150_v3  ;;  %105 = vmatpush1.bf16.msra.mxu0 %v963_v6  ;;  %v967_v8 = vld [vmem:[%s1361_s0] sm:$0xff]   ;;  %v52_v13 = vshrl.u32 %v51_v12, 7  ;;  %vm246_vm1 = vcmask 523264   ;;  %v971_v62 = vld [vmem:[%s1361_s0 + $0x8] sm:$0xff]   ;;  %v972_v63 = vld [vmem:[%s1361_s0 + $0x10] sm:$0xff]   ;;  %s1095_s26 = smov [#allocation6]  }
  0x18   :  { %406 = vmatprep.subr.bf16.mxu0 %v1145_v1  ;;  %v49_v15 = vld [vmem:[%s1364_s3] sm:$0x3]  ;;  %s1094_s3 = smov 64   ;;  %v973_v5 = vld [vmem:[%s1361_s0 + $0x18] sm:$0xff]   ;;  %s897_s27 = sshll.u32 %s1095_s26, 4  ;;  %s898_s27 = int_to_ptr.vmem [resolvable:$true] %s897_s27 }
  0x19   :  { %v53_v14 = vsub.s32 0, %v52_v13  ;;  %v57_v16 = vsub.s32 1, %v52_v13  ;;  %p1069_p9 = scmp.lt.s32.totalorder %s898_s27, %s898_s27 }
  0x1a   :  { %253 = vmatpush1.bf16.msra.mxu1 %v1152_v4  ;;  %919 = vmatmul.mubr.msk.bf16.vlgmr.msra.gmra.mrb[0].mxu0 %vm91_vm0, %v967_v8 }
  0x1b   :  { %254 = vmatprep.subr.bf16.mxu1 %v1162_v7  ;;  %407 = vmatpush1.bf16.msra.mxu0 %v1147_v2  ;;  %v1203_v19 = vrot.slane %v49_v15, %v53_v14  ;;  %v1205_v21 = vrot.slane %v49_v15, %v57_v16 }
  0x1c   :  { %146 = vmatprep.mubr.bf16.mxu0 %v1093_v0  ;;  %408 = vmatprep.subr.bf16.mxu0 %v1150_v3 }
  0x1e   :  { %255 = vmatpush1.bf16.msra.mxu1 %v1168_v9 }
  0x1f   :  { %256 = vmatprep.subr.bf16.mxu1 %v1170_v10  ;;  %409 = vmatpush1.bf16.msra.mxu0 %v1152_v4 }
  0x20   :  { %410 = vmatprep.subr.bf16.mxu0 %v1162_v7 }
  0x22   :  { %257 = vmatpush1.bf16.msra.mxu1 %v1178_v11  ;;  %920 = vmatmul.mubr.msk.bf16.gmra.mrb[4].mxu0 %vm91_vm0, %v971_v62 }
  0x23   :  { %328 = vmatprep.subr.bf16.mxu1 %v1145_v1  ;;  %411 = vmatpush1.bf16.msra.mxu0 %v1168_v9 }
  0x24   :  { %412 = vmatprep.subr.bf16.mxu0 %v1170_v10  ;;  %156 = vmatprep.mubr.bf16.mxu0 %v1093_v0 }
  0x25   :  { %283 = vmatmul.mubr.bf16.vlgmr.msra.gmra.mrb[0].mxu1 %v1093_v0 }
  0x26   :  { %329 = vmatpush1.bf16.msra.mxu1 %v1147_v2  ;;  %360 = vmatprep.mubr.bf16.mxu1 %v1093_v0 }
  0x27   :  { %330 = vmatprep.subr.bf16.mxu1 %v1150_v3  ;;  %413 = vmatpush1.bf16.msra.mxu0 %v1178_v11 }
  0x28   :  { %562 = vmatprep.subr.bf16.mxu0 %v1145_v1 }
  0x2a   :  { %331 = vmatpush1.bf16.msra.mxu1 %v1152_v4  ;;  %921 = vmatmul.mubr.msk.bf16.gmra.mrb[8].mxu0 %vm91_vm0, %v972_v63 }
  0x2b   :  { %332 = vmatprep.subr.bf16.mxu1 %v1162_v7  ;;  %166 = vmatprep.mubr.bf16.mxu0 %v1093_v0 }
  0x2e   :  { %333 = vmatpush1.bf16.msra.mxu1 %v1168_v9 }
  0x2f   :  { %334 = vmatprep.subr.bf16.mxu1 %v1170_v10 }
  0x32   :  { %335 = vmatpush1.bf16.msra.mxu1 %v1178_v11  ;;  %922 = vmatmul.mubr.msk.bf16.gmra.mrb[12].mxu0 %vm91_vm0, %v973_v5 }
  0x33   :  { %484 = vmatprep.subr.bf16.mxu1 %v1145_v1  ;;  %438 = vmatprep.mubr.bf16.mxu0 %v1093_v0 }
  0xed   :  { %v138_v17 = vpop.f32.mrb[0].mxu0 }
  0xee   :  { %v140_v18 = vpop.f32.mrb[1].mxu0  ;;  %v139_v23 = vadd.f32 %v138_v17, %v1203_v19 }
  0xef   :  { %v142_v20 = vpop.f32.mrb[2].mxu0  ;;  %v141_v24 = vadd.f32 %v140_v18, %v1205_v21 }
  0xf0   :  { %v144_v22 = vpop.f32.mrb[3].mxu0  ;;  %v143_v47 = vadd.f32 %v142_v20, %v1203_v19 }
  0xf1   :  { %v145_v48 = vadd.f32 %v144_v22, %v1205_v21 }
  0xf5   :  { %v148_v14 = vpop.f32.mrb[4].mxu0 }
  0xf6   :  { %v150_v15 = vpop.f32.mrb[5].mxu0 }
  0xf7   :  { %v1242_v16 = vpop.f32.mrb[6].mxu0 }
  0xf8   :  { %v284_v25 = vpop.f32.mrb[0].mxu1  ;;  %v1244_v17 = vpop.f32.mrb[7].mxu0 }
  0xf9   :  { %v291_v26 = vadd.f32 %v284_v25, %v139_v23  ;;  %v286_v27 = vpop.f32.mrb[1].mxu1 }
  0xfa   :  { %v292_v28 = vadd.f32 %v286_v27, %v141_v24  ;;  %v288_v29 = vpop.f32.mrb[2].mxu1 }
  0xfb   :  { %v289_v30 = vpop.f32.mrb[3].mxu1  ;;  %v931_v32 = vmul.f32 -1.442695, %v291_v26 }
  0xfc   :  { %974 = vtanh.f32 %v292_v28 }
  0xfd   :  { %976 = vpow2.f32 %v931_v32  ;;  %v1246_v18 = vpop.f32.mrb[8].mxu0 }
  0xfe   :  { %v1248_v20 = vpop.f32.mrb[9].mxu0 }
  0xff   :  { %v1250_v22 = vpop.f32.mrb[10].mxu0 }
 0x100   :  { %v1252_v23 = vpop.f32.mrb[11].mxu0 }
 0x105   :  { %v1254_v24 = vpop.f32.mrb[12].mxu0 }
 0x106   :  { %v975_v31 = vpop.eup %974  ;;  %v1256_v25 = vpop.f32.mrb[13].mxu0 }
 0x107   :  { %304 = vrot.lane.b32.xlu0 %v975_v31, %s1094_s3  ;;  %v977_v33 = vpop.eup %976  ;;  %v300_v42 = vmul.f32 0.5, %v975_v31  ;;  %v1258_v26 = vpop.f32.mrb[14].mxu0 }
 0x108   :  { %v296_v34 = vadd.f32 1.0, %v977_v33  ;;  %v1260_v27 = vpop.f32.mrb[15].mxu0  ;;  %v149_v33 = vadd.f32 %v148_v14, %v1203_v19 }
 0x109   :  { %v301_v43 = vadd.f32 0.5, %v300_v42 }
 0x10a   :  { %978 = vrcp.f32 %v296_v34  ;;  %v151_v34 = vadd.f32 %v150_v15, %v1205_v21 }
 0x114   :  { %v979_v35 = vpop.eup %978 }
 0x115   :  { %v302_v38 = vmul.f32 0.0, %v979_v35 }
 0x179   :  { %v305_v36 = vpop.permute.xlu0 %304 }
 0x17a   :  { %v307_v37 = vmul.f32 %v979_v35, %v305_v36 }
 0x17c   :  { %309 = vrot.lane.b32.xlu0 %v307_v37, %s1094_s3 }
 0x1ee   :  { %v310_v39 = vpop.permute.xlu0 %309 }
 0x1ef   :  { %v312_v40 = vadd.f32 %v310_v39, %v302_v38 }
 0x1f1   :  { %980 = vtanh.f32 %v312_v40 }
 0x1fb   :  { %v981_v41 = vpop.eup %980 }
 0x1fc   :  { %315 = vrot.lane.b32.xlu1 %v981_v41, %s1094_s3 }
 0x26e   :  { %v316_v44 = vpop.permute.xlu1 %315 }
 0x26f   :  { %v318_v45 = vmul.f32 %v316_v44, %v301_v43 }
 0x271   :  { %v324_v46 = vpack.c.bf16 %v318_v45, %v318_v45 }
 0x273   :  { %932 = vmatmul.mubr.msk.bf16.vlgmr.msra.gmra.mrb[4].mxu1 %vm246_vm1, %v324_v46 }
 0x274   :  { %485 = vmatpush1.bf16.msra.mxu1 %v1147_v2  ;;  %516 = vmatprep.mubr.bf16.mxu1 %v1093_v0 }
 0x275   :  { %486 = vmatprep.subr.bf16.mxu1 %v1150_v3 }
 0x278   :  { %487 = vmatpush1.bf16.msra.mxu1 %v1152_v4 }
 0x279   :  { %488 = vmatprep.subr.bf16.mxu1 %v1162_v7 }
 0x27c   :  { %489 = vmatpush1.bf16.msra.mxu1 %v1168_v9 }
 0x27d   :  { %490 = vmatprep.subr.bf16.mxu1 %v1170_v10 }
 0x280   :  { %491 = vmatpush1.bf16.msra.mxu1 %v1178_v11 }
 0x281   :  { %640 = vmatprep.subr.bf16.mxu1 %v1145_v1 }
 0x346   :  { %v362_v49 = vpop.f32.mrb[4].mxu1 }
 0x347   :  { %v369_v50 = vadd.f32 %v362_v49, %v143_v47  ;;  %v364_v51 = vpop.f32.mrb[5].mxu1 }
 0x348   :  { %v370_v52 = vadd.f32 %v364_v51, %v145_v48  ;;  %v366_v53 = vpop.f32.mrb[6].mxu1 }
 0x349   :  { %v367_v54 = vpop.f32.mrb[7].mxu1  ;;  %v933_v56 = vmul.f32 -1.442695, %v369_v50 }
 0x34a   :  { %982 = vtanh.f32 %v370_v52 }
 0x34b   :  { %984 = vpow2.f32 %v933_v56 }
 0x354   :  { %v983_v55 = vpop.eup %982 }
 0x355   :  { %382 = vrot.lane.b32.xlu1 %v983_v55, %s1094_s3  ;;  %v985_v57 = vpop.eup %984  ;;  %v378_v28 = vmul.f32 0.5, %v983_v55 }
 0x356   :  { %v374_v58 = vadd.f32 1.0, %v985_v57  ;;  %v153_v57 = vadd.f32 %v1242_v16, %v1203_v19 }
 0x357   :  { %v379_v29 = vadd.f32 0.5, %v378_v28 }
 0x358   :  { %986 = vrcp.f32 %v374_v58  ;;  %v155_v58 = vadd.f32 %v1244_v17, %v1205_v21 }
 0x362   :  { %v987_v59 = vpop.eup %986 }
 0x363   :  { %v380_v6 = vmul.f32 %v987_v59, %v312_v40 }
 0x3c7   :  { %v383_v60 = vpop.permute.xlu1 %382 }
 0x3c8   :  { %v385_v61 = vmul.f32 %v987_v59, %v383_v60 }
 0x3ca   :  { %387 = vrot.lane.b32.xlu0 %v385_v61, %s1094_s3 }
 0x43c   :  { %v388_v8 = vpop.permute.xlu0 %387 }
 0x43d   :  { %v390_v12 = vadd.f32 %v388_v8, %v380_v6 }
 0x43f   :  { %988 = vtanh.f32 %v390_v12 }
 0x449   :  { %v989_v13 = vpop.eup %988 }
 0x44a   :  { %393 = vrot.lane.b32.xlu1 %v989_v13, %s1094_s3 }
 0x4bc   :  { %v394_v30 = vpop.permute.xlu1 %393 }
 0x4bd   :  { %v396_v31 = vmul.f32 %v394_v30, %v379_v29 }
 0x4bf   :  { %v402_v32 = vpack.c.bf16 %v396_v31, %v396_v31 }
 0x4c1   :  { %934 = vmatmul.mubr.msk.bf16.vlgmr.msra.gmra.mrb[16].mxu0 %vm246_vm1, %v402_v32 }
 0x4c2   :  { %563 = vmatpush1.bf16.msra.mxu0 %v1147_v2  ;;  %594 = vmatprep.mubr.bf16.mxu0 %v1093_v0 }
 0x4c3   :  { %564 = vmatprep.subr.bf16.mxu0 %v1150_v3 }
 0x4c6   :  { %565 = vmatpush1.bf16.msra.mxu0 %v1152_v4 }
 0x4c7   :  { %566 = vmatprep.subr.bf16.mxu0 %v1162_v7 }
 0x4ca   :  { %567 = vmatpush1.bf16.msra.mxu0 %v1168_v9 }
 0x4cb   :  { %568 = vmatprep.subr.bf16.mxu0 %v1170_v10 }
 0x4ce   :  { %569 = vmatpush1.bf16.msra.mxu0 %v1178_v11 }
 0x4cf   :  { %718 = vmatprep.subr.bf16.mxu0 %v1145_v1 }
 0x594   :  { %v440_v35 = vpop.f32.mrb[16].mxu0 }
 0x595   :  { %v447_v36 = vadd.f32 %v440_v35, %v149_v33  ;;  %v442_v37 = vpop.f32.mrb[17].mxu0  ;;  %v159_v35 = vadd.f32 %v1246_v18, %v1203_v19 }
 0x596   :  { %v448_v38 = vadd.f32 %v442_v37, %v151_v34  ;;  %v444_v39 = vpop.f32.mrb[18].mxu0 }
 0x597   :  { %v445_v40 = vpop.f32.mrb[19].mxu0  ;;  %v935_v42 = vmul.f32 -1.442695, %v447_v36  ;;  %v161_v36 = vadd.f32 %v1248_v20, %v1205_v21 }
 0x598   :  { %990 = vtanh.f32 %v448_v38 }
 0x599   :  { %992 = vpow2.f32 %v935_v42 }
 0x5a2   :  { %v991_v41 = vpop.eup %990 }
 0x5a3   :  { %460 = vrot.lane.b32.xlu0 %v991_v41, %s1094_s3  ;;  %v993_v43 = vpop.eup %992  ;;  %v456_v52 = vmul.f32 0.5, %v991_v41 }
 0x5a4   :  { %v452_v44 = vadd.f32 1.0, %v993_v43 }
 0x5a5   :  { %v457_v53 = vadd.f32 0.5, %v456_v52 }
 0x5a6   :  { %994 = vrcp.f32 %v452_v44 }
 0x5b0   :  { %v995_v45 = vpop.eup %994 }
 0x5b1   :  { %v458_v48 = vmul.f32 %v995_v45, %v390_v12 }
 0x615   :  { %v461_v46 = vpop.permute.xlu0 %460 }
 0x616   :  { %v463_v47 = vmul.f32 %v995_v45, %v461_v46 }
 0x618   :  { %465 = vrot.lane.b32.xlu1 %v463_v47, %s1094_s3 }
 0x68a   :  { %v466_v49 = vpop.permute.xlu1 %465 }
 0x68b   :  { %v468_v50 = vadd.f32 %v466_v49, %v458_v48 }
 0x68d   :  { %996 = vtanh.f32 %v468_v50 }
 0x697   :  { %v997_v51 = vpop.eup %996 }
 0x698   :  { %471 = vrot.lane.b32.xlu0 %v997_v51, %s1094_s3 }
 0x70a   :  { %v472_v54 = vpop.permute.xlu0 %471 }
 0x70b   :  { %v474_v55 = vmul.f32 %v472_v54, %v457_v53 }
 0x70d   :  { %v480_v56 = vpack.c.bf16 %v474_v55, %v474_v55 }
 0x70f   :  { %936 = vmatmul.mubr.msk.bf16.vlgmr.msra.gmra.mrb[8].mxu1 %vm246_vm1, %v480_v56 }
 0x710   :  { %641 = vmatpush1.bf16.msra.mxu1 %v1147_v2  ;;  %672 = vmatprep.mubr.bf16.mxu1 %v1093_v0 }
 0x711   :  { %642 = vmatprep.subr.bf16.mxu1 %v1150_v3 }
 0x714   :  { %643 = vmatpush1.bf16.msra.mxu1 %v1152_v4 }
 0x715   :  { %644 = vmatprep.subr.bf16.mxu1 %v1162_v7 }
 0x718   :  { %645 = vmatpush1.bf16.msra.mxu1 %v1168_v9 }
 0x719   :  { %646 = vmatprep.subr.bf16.mxu1 %v1170_v10 }
 0x71c   :  { %647 = vmatpush1.bf16.msra.mxu1 %v1178_v11 }
 0x71d   :  { %796 = vmatprep.subr.bf16.mxu1 %v1145_v1 }
 0x7e2   :  { %v518_v59 = vpop.f32.mrb[8].mxu1 }
 0x7e3   :  { %v525_v60 = vadd.f32 %v518_v59, %v153_v57  ;;  %v520_v61 = vpop.f32.mrb[9].mxu1  ;;  %v163_v57 = vadd.f32 %v1250_v22, %v1203_v19 }
 0x7e4   :  { %v526_v62 = vadd.f32 %v520_v61, %v155_v58  ;;  %v522_v63 = vpop.f32.mrb[10].mxu1 }
 0x7e5   :  { %v523_v5 = vpop.f32.mrb[11].mxu1  ;;  %v937_v8 = vmul.f32 -1.442695, %v525_v60 }
 0x7e6   :  { %998 = vtanh.f32 %v526_v62 }
 0x7e7   :  { %1000 = vpow2.f32 %v937_v8 }
 0x7f0   :  { %v999_v6 = vpop.eup %998 }
 0x7f1   :  { %538 = vrot.lane.b32.xlu1 %v999_v6, %s1094_s3  ;;  %v1001_v12 = vpop.eup %1000  ;;  %v534_v30 = vmul.f32 0.5, %v999_v6 }
 0x7f2   :  { %v530_v1 = vadd.f32 1.0, %v1001_v12 }
 0x7f3   :  { %v535_v31 = vadd.f32 0.5, %v534_v30 }
 0x7f4   :  { %1002 = vrcp.f32 %v530_v1 }
 0x7fe   :  { %v1003_v13 = vpop.eup %1002 }
 0x7ff   :  { %v536_v16 = vmul.f32 %v1003_v13, %v468_v50 }
 0x863   :  { %v539_v14 = vpop.permute.xlu1 %538 }
 0x864   :  { %v541_v15 = vmul.f32 %v1003_v13, %v539_v14 }
 0x866   :  { %543 = vrot.lane.b32.xlu0 %v541_v15, %s1094_s3  ;;  %v169_v15 = vadd.f32 %v1254_v24, %v1203_v19 }
 0x8d8   :  { %v544_v17 = vpop.permute.xlu0 %543 }
 0x8d9   :  { %v546_v28 = vadd.f32 %v544_v17, %v536_v16  ;;  %v171_v16 = vadd.f32 %v1256_v25, %v1205_v21 }
 0x8db   :  { %1004 = vtanh.f32 %v546_v28 }
 0x8e5   :  { %v1005_v29 = vpop.eup %1004 }
 0x8e6   :  { %549 = vrot.lane.b32.xlu1 %v1005_v29, %s1094_s3 }
 0x958   :  { %v550_v32 = vpop.permute.xlu1 %549 }
 0x959   :  { %v552_v33 = vmul.f32 %v550_v32, %v535_v31 }
 0x95b   :  { %v558_v34 = vpack.c.bf16 %v552_v33, %v552_v33 }
 0x95d   :  { %938 = vmatmul.mubr.msk.bf16.vlgmr.msra.gmra.mrb[20].mxu0 %vm246_vm1, %v558_v34 }
 0x95e   :  { %719 = vmatpush1.bf16.msra.mxu0 %v1147_v2  ;;  %750 = vmatprep.mubr.bf16.mxu0 %v1093_v0 }
 0x95f   :  { %720 = vmatprep.subr.bf16.mxu0 %v1150_v3 }
 0x962   :  { %721 = vmatpush1.bf16.msra.mxu0 %v1152_v4 }
 0x963   :  { %722 = vmatprep.subr.bf16.mxu0 %v1162_v7 }
 0x966   :  { %723 = vmatpush1.bf16.msra.mxu0 %v1168_v9 }
 0x967   :  { %724 = vmatprep.subr.bf16.mxu0 %v1170_v10 }
 0x96a   :  { %725 = vmatpush1.bf16.msra.mxu0 %v1178_v11 }
 0xa30   :  { %v596_v37 = vpop.f32.mrb[20].mxu0 }
 0xa31   :  { %v603_v38 = vadd.f32 %v596_v37, %v159_v35  ;;  %v598_v39 = vpop.f32.mrb[21].mxu0 }
 0xa32   :  { %v604_v40 = vadd.f32 %v598_v39, %v161_v36  ;;  %v600_v41 = vpop.f32.mrb[22].mxu0 }
 0xa33   :  { %v601_v42 = vpop.f32.mrb[23].mxu0  ;;  %v939_v44 = vmul.f32 -1.442695, %v603_v38 }
 0xa34   :  { %1006 = vtanh.f32 %v604_v40 }
 0xa35   :  { %1008 = vpow2.f32 %v939_v44 }
 0xa3e   :  { %v1007_v43 = vpop.eup %1006 }
 0xa3f   :  { %616 = vrot.lane.b32.xlu0 %v1007_v43, %s1094_s3  ;;  %v1009_v45 = vpop.eup %1008  ;;  %v612_v52 = vmul.f32 0.5, %v1007_v43 }
 0xa40   :  { %v608_v46 = vadd.f32 1.0, %v1009_v45 }
 0xa41   :  { %v613_v53 = vadd.f32 0.5, %v612_v52 }
 0xa42   :  { %1010 = vrcp.f32 %v608_v46 }
 0xa4c   :  { %v1011_v47 = vpop.eup %1010 }
 0xa4d   :  { %v614_v20 = vmul.f32 %v1011_v47, %v546_v28 }
 0xab1   :  { %v617_v18 = vpop.permute.xlu0 %616 }
 0xab2   :  { %v619_v48 = vmul.f32 %v1011_v47, %v617_v18  ;;  %v173_v47 = vadd.f32 %v1258_v26, %v1203_v19  ;;  %v175_v18 = vadd.f32 %v1260_v27, %v1205_v21 }
 0xab4   :  { %621 = vrot.lane.b32.xlu1 %v619_v48, %s1094_s3 }
 0xb26   :  { %v622_v49 = vpop.permute.xlu1 %621 }
 0xb27   :  { %v624_v50 = vadd.f32 %v622_v49, %v614_v20 }
 0xb29   :  { %1012 = vtanh.f32 %v624_v50 }
 0xb33   :  { %v1013_v51 = vpop.eup %1012 }
 0xb34   :  { %627 = vrot.lane.b32.xlu0 %v1013_v51, %s1094_s3 }
 0xba6   :  { %v628_v54 = vpop.permute.xlu0 %627 }
 0xba7   :  { %v630_v55 = vmul.f32 %v628_v54, %v613_v53 }
 0xba9   :  { %v636_v56 = vpack.c.bf16 %v630_v55, %v630_v55 }
 0xbab   :  { %940 = vmatmul.mubr.msk.bf16.vlgmr.msra.gmra.mrb[12].mxu1 %vm246_vm1, %v636_v56 }
 0xbac   :  { %797 = vmatpush1.bf16.msra.mxu1 %v1147_v2  ;;  %828 = vmatprep.mubr.bf16.mxu1 %v1093_v0  ;;  %v165_v2 = vadd.f32 %v1252_v23, %v1205_v21 }
 0xbad   :  { %798 = vmatprep.subr.bf16.mxu1 %v1150_v3 }
 0xbb0   :  { %799 = vmatpush1.bf16.msra.mxu1 %v1152_v4 }
 0xbb1   :  { %800 = vmatprep.subr.bf16.mxu1 %v1162_v7 }
 0xbb4   :  { %801 = vmatpush1.bf16.msra.mxu1 %v1168_v9 }
 0xbb5   :  { %802 = vmatprep.subr.bf16.mxu1 %v1170_v10 }
 0xbb8   :  { %803 = vmatpush1.bf16.msra.mxu1 %v1178_v11 }
 0xc7e   :  { %v674_v58 = vpop.f32.mrb[12].mxu1 }
 0xc7f   :  { %v681_v0 = vadd.f32 %v674_v58, %v163_v57  ;;  %v676_v59 = vpop.f32.mrb[13].mxu1 }
 0xc80   :  { %v682_v3 = vadd.f32 %v676_v59, %v165_v2  ;;  %v678_v60 = vpop.f32.mrb[14].mxu1 }
 0xc81   :  { %v679_v4 = vpop.f32.mrb[15].mxu1  ;;  %v941_v9 = vmul.f32 -1.442695, %v681_v0  ;;  %v946_v60 = vld [vmem:[%s1365_s4] ss:$0 sm:$0xff]  ;;  %s1064_s4 = scalar_lea.vmem %s898_s27, 128 }
 0xc82   :  { %1014 = vtanh.f32 %v682_v3  ;;  %p1065_p8 = scmp.ne.s32.totalorder %s898_s27, %s1064_s4  ;;  %p1070_p10 = scmp.lt.s32.totalorder %s1064_s4, %s1064_s4 }
 0xc83   :  { %1016 = vpow2.f32 %v941_v9 }
 0xc84   :  { %p1071_p11 = por %p1070_p10, %p1069_p9 }
 0xc86   :  { %p1072_p12 = pnand %p1071_p11, %p1065_p8 }
 0xc8c   :  { %v1015_v7 = vpop.eup %1014 }
 0xc8d   :  { %694 = vrot.lane.b32.xlu1 %v1015_v7, %s1094_s3  ;;  %v1017_v10 = vpop.eup %1016  ;;  %v690_v8 = vmul.f32 0.5, %v1015_v7 }
 0xc8e   :  { %v686_v11 = vadd.f32 1.0, %v1017_v10  ;;  %v947_v10 = vld [vmem:[%s1366_s5] ss:$0 sm:$0xff] }
 0xc8f   :  { %v691_v12 = vadd.f32 0.5, %v690_v8 }
 0xc90   :  { %1018 = vrcp.f32 %v686_v11 }
 0xc9a   :  { %v1019_v61 = vpop.eup %1018 }
 0xc9b   :  { %v692_v23 = vmul.f32 %v1019_v61, %v624_v50 }
 0xcff   :  { %v695_v22 = vpop.permute.xlu1 %694 }
 0xd00   :  { %v697_v62 = vmul.f32 %v1019_v61, %v695_v22 }
 0xd02   :  { %699 = vrot.lane.b32.xlu0 %v697_v62, %s1094_s3 }
 0xd74   :  { %v700_v63 = vpop.permute.xlu0 %699 }
 0xd75   :  { %v702_v5 = vadd.f32 %v700_v63, %v692_v23 }
 0xd77   :  { %1020 = vtanh.f32 %v702_v5 }
 0xd81   :  { %v1021_v6 = vpop.eup %1020 }
 0xd82   :  { %705 = vrot.lane.b32.xlu1 %v1021_v6, %s1094_s3 }
 0xdf4   :  { %v706_v1 = vpop.permute.xlu1 %705 }
 0xdf5   :  { %v708_v13 = vmul.f32 %v706_v1, %v691_v12 }
 0xdf7   :  { %v714_v14 = vpack.c.bf16 %v708_v13, %v708_v13 }
 0xdf9   :  { %942 = vmatmul.mubr.msk.bf16.vlgmr.msra.gmra.mrb[24].mxu0 %vm246_vm1, %v714_v14 }
 0xecc   :  { %v752_v17 = vpop.f32.mrb[24].mxu0 }
 0xecd   :  { %v759_v28 = vadd.f32 %v752_v17, %v169_v15  ;;  %v754_v29 = vpop.f32.mrb[25].mxu0 }
 0xece   :  { %v760_v30 = vadd.f32 %v754_v29, %v171_v16  ;;  %v756_v31 = vpop.f32.mrb[26].mxu0 }
 0xecf   :  { %v757_v32 = vpop.f32.mrb[27].mxu0  ;;  %v943_v34 = vmul.f32 -1.442695, %v759_v28 }
 0xed0   :  { %1022 = vtanh.f32 %v760_v30 }
 0xed1   :  { %1024 = vpow2.f32 %v943_v34 }
 0xeda   :  { %v1023_v33 = vpop.eup %1022 }
 0xedb   :  { %772 = vrot.lane.b32.xlu0 %v1023_v33, %s1094_s3  ;;  %v1025_v35 = vpop.eup %1024  ;;  %v768_v42 = vmul.f32 0.5, %v1023_v33 }
 0xedc   :  { %v764_v36 = vadd.f32 1.0, %v1025_v35 }
 0xedd   :  { %v769_v43 = vadd.f32 0.5, %v768_v42 }
 0xede   :  { %1026 = vrcp.f32 %v764_v36 }
 0xee8   :  { %v1027_v37 = vpop.eup %1026 }
 0xee9   :  { %v770_v25 = vmul.f32 %v1027_v37, %v702_v5 }
 0xf4d   :  { %v773_v24 = vpop.permute.xlu0 %772 }
 0xf4e   :  { %v775_v38 = vmul.f32 %v1027_v37, %v773_v24 }
 0xf50   :  { %777 = vrot.lane.b32.xlu1 %v775_v38, %s1094_s3 }
 0xfc2   :  { %v778_v39 = vpop.permute.xlu1 %777 }
 0xfc3   :  { %v780_v40 = vadd.f32 %v778_v39, %v770_v25 }
 0xfc5   :  { %1028 = vtanh.f32 %v780_v40 }
 0xfcf   :  { %v1029_v41 = vpop.eup %1028 }
 0xfd0   :  { %783 = vrot.lane.b32.xlu0 %v1029_v41, %s1094_s3 }
0x1042   :  { %v784_v44 = vpop.permute.xlu0 %783 }
0x1043   :  { %v786_v45 = vmul.f32 %v784_v44, %v769_v43 }
0x1045   :  { %v792_v46 = vpack.c.bf16 %v786_v45, %v786_v45 }
0x1047   :  { %944 = vmatmul.mubr.msk.bf16.vlgmr.msra.gmra.mrb[16].mxu1 %vm246_vm1, %v792_v46 }
0x111a   :  { %v830_v48 = vpop.f32.mrb[16].mxu1 }
0x111b   :  { %v837_v20 = vadd.f32 %v830_v48, %v173_v47  ;;  %v832_v49 = vpop.f32.mrb[17].mxu1 }
0x111c   :  { %v838_v50 = vadd.f32 %v832_v49, %v175_v18  ;;  %v834_v51 = vpop.f32.mrb[18].mxu1 }
0x111d   :  { %v835_v52 = vpop.f32.mrb[19].mxu1  ;;  %v945_v54 = vmul.f32 -1.442695, %v837_v20 }
0x111e   :  { %1030 = vtanh.f32 %v838_v50 }
0x111f   :  { %1032 = vpow2.f32 %v945_v54 }
0x1128   :  { %v1031_v53 = vpop.eup %1030 }
0x1129   :  { %850 = vrot.lane.b32.xlu1 %v1031_v53, %s1094_s3  ;;  %v1033_v55 = vpop.eup %1032  ;;  %v846_v0 = vmul.f32 0.5, %v1031_v53 }
0x112a   :  { %v842_v56 = vadd.f32 1.0, %v1033_v55 }
0x112b   :  { %v847_v59 = vadd.f32 0.5, %v846_v0 }
0x112c   :  { %1034 = vrcp.f32 %v842_v56 }
0x1136   :  { %v1035_v57 = vpop.eup %1034 }
0x1137   :  { %v848_v21 = vmul.f32 %v1035_v57, %v780_v40 }
0x119b   :  { %v851_v19 = vpop.permute.xlu1 %850 }
0x119c   :  { %v853_v26 = vmul.f32 %v1035_v57, %v851_v19 }
0x119e   :  { %855 = vrot.lane.b32.xlu0 %v853_v26, %s1094_s3 }
0x1210   :  { %v856_v27 = vpop.permute.xlu0 %855 }
0x1211   :  { %v858_v2 = vadd.f32 %v856_v27, %v848_v21 }
0x1213   :  { %1036 = vtanh.f32 %v858_v2 }
0x121d   :  { %v1037_v58 = vpop.eup %1036 }
0x121e   :  { %861 = vrot.lane.b32.xlu1 %v1037_v58, %s1094_s3 }
0x1290   :  { %v862_v3 = vpop.permute.xlu1 %861 }
0x1291   :  { %v864_v4 = vmul.f32 %v862_v3, %v847_v59 }
0x1293   :  { %v872_v7 = vmul.f32 %v946_v60, %v864_v4 }
0x1295   :  { %v873_v9 = vsel %vm246_vm1, %v872_v7, 0.0 }
0x1296   :  { %874 = vadd.xlane.f32.xlu0 %v873_v9 }
0x1323   :  { %v875_v11 = vpop.xlane.xlu0 %874 }
0x1324   :  { %v883_v61 = vadd.f32 %v947_v10, %v875_v11 }
0x1326   :  { %v948_v22 = vmul.f32 -1.442695, %v883_v61 }
0x1328   :  { %1038 = vpow2.f32 %v948_v22 }
0x1332   :  { %v1039_v62 = vpop.eup %1038 }
0x1333   :  { %v887_v23 = vadd.f32 1.0, %v1039_v62 }
0x1335   :  { %1040 = vrcp.f32 %v887_v23 }
0x133f   :  { %v1041_v63 = vpop.eup %1040 }
0x1340   :  { %890 = vst [vmem:[#allocation6] sm:$0xff] %v1041_v63 }
0x1341   :  { %1075 = shalt.err (!%p1072_p12)
}
0x1342   :  { %s1076_s29 = scalar_lea.hbm %s1367_s6, 128 }
0x1343   :  { %p1077_p13 = scmp.ne.s32.totalorder %s1367_s6, %s1076_s29  ;;  %p1080_p0 = scmp.lt.u32.totalorder %s1076_s29, %s1367_s6 }
0x1345   :  { %p1082_p1 = pnand %p1080_p0, %p1077_p13 }
0x1347   :  { %1085 = shalt.err (!%p1082_p1)
}
0x1348   :  { %900 = dma.vmem_to_hbm [thread:$0]  %s898_s27, 128, %s1367_s6, [#allocation5]  }
0x1349   :  { %1088 = dma.done.wait [#allocation5], 128  }
0x134a   :  { %1089 = vsyncadd [#allocation5], 4294967168 }
0x134b   :  { %904 = vsyncpa [#allocation4], 1 }
0x134c   :  { %905 = vsyncpa [#allocation5], 1 }

</bundles_post_ra>
